<compile_context>
chip_gen: v7x
topology: tpu7x:2x2x1
jax: 0.10.0
libtpu: 0.0.40
codegen_flags: <defaults>
</compile_context>

<pallas_src>
import functools

import jax
import jax.numpy as jnp
from jax.experimental import pallas as pl
from jax.experimental.pallas import tpu as pltpu


def _artanh(x):
    # geoopt-style clamped artanh, expressed via logs (EUP-friendly; matches
    # PoincareBall.dist0 numerics to well within fp32 tolerance).
    eps = 1e-7
    x = jnp.clip(x, -1.0 + eps, 1.0 - eps)
    return 0.5 * (jnp.log1p(x) - jnp.log1p(-x))


def _centripetal_loss_kernel(a_ref, p_ref, out_ref, *, c, margin, total_n, tb,
                             tiles_per_core):
    core = pl.program_id(0)      # megacore split axis (size 1 except on v7x)
    i = pl.program_id(1)         # reduction axis over batch tiles

    @pl.when(i == 0)
    def _():
        out_ref[...] = jnp.zeros_like(out_ref)

    a = a_ref[...].astype(jnp.float32)   # (tb, D) child reps, native row layout
    p = p_ref[...].astype(jnp.float32)   # (tb, D) parent reps

    sqrt_c = float(c) ** 0.5
    scale = 2.0 / sqrt_c

    # Lane reduce over D -> (tb, 1) norms.
    a_norm = jnp.sqrt(jnp.sum(a * a, axis=-1, keepdims=True))
    p_norm = jnp.sqrt(jnp.sum(p * p, axis=-1, keepdims=True))

    d_a = scale * _artanh(sqrt_c * a_norm)   # dist(child, origin)
    d_p = scale * _artanh(sqrt_c * p_norm)   # dist(parent, origin)

    # relu(margin + d(parent, 0) - d(child, 0))
    loss = jnp.maximum(jnp.float32(margin) + d_p - d_a, 0.0)   # (tb, 1)

    # Mask ragged tail rows (and any clamped duplicate tile).  Applied AFTER
    # the transcendental math so undefined edge-block data is discarded.
    row0 = (core * tiles_per_core + i) * tb
    rows = row0 + jax.lax.broadcasted_iota(jnp.int32, (tb, 1), 0)
    loss = jnp.where(rows < total_n, loss, 0.0)

    # Per-tile scalar partial sum into the resident (1,1,1) accumulator block.
    out_ref[...] += jnp.sum(loss, axis=0, keepdims=True)[None]


def hyperbolic_centripetal_loss(rep_anchor, rep_positive, rep_negative=None,
                                *, c=1.0, margin=0.1, batch_tile=None):
    """Pallas implementation of HyperbolicCentripetalLoss.forward.

    rep_negative is accepted for interface parity but (as in the PyTorch
    module) does not participate in the loss.
    """
    del rep_negative  # unused by this loss
    B, D = rep_anchor.shape
    assert rep_positive.shape == (B, D)

    itemsize = jnp.dtype(rep_anchor.dtype).itemsize

    # Generation-aware VMEM budgeting (v5e/v6e: 128 MiB, v7x: 64 MiB).
    try:
        vmem_cap = int(pltpu.get_tpu_info().vmem_capacity_bytes)
    except Exception:
        vmem_cap = 64 * 1024 * 1024
    vmem_limit = min((vmem_cap * 3) // 4, 96 * 1024 * 1024)

    if batch_tile is None:
        budget = vmem_limit // 2
        # 2 inputs x 2 pipeline buffers in input dtype, plus ~4 f32-sized
        # in-kernel temporaries (upcasts + squares) per batch row.
        bytes_per_row = max(1, D * (4 * itemsize + 16))
        tb = budget // bytes_per_row
        tb = max(8, min(65536, (tb // 8) * 8))
    else:
        tb = int(batch_tile)

    if tb >= B:
        tb = B          # full-dim block (allowed even if B % 8 != 0)
        n_tiles = 1
    else:
        n_tiles = pl.cdiv(B, tb)

    # Megacore split across the two TensorCores — v7x only.
    split = 1
    try:
        kind = jax.devices()[0].device_kind.lower()
        if ("v7" in kind or "7x" in kind) and n_tiles >= 2:
            split = 2
    except Exception:
        pass
    tiles_per_core = pl.cdiv(n_tiles, split)
    last_tile = n_tiles - 1

    kernel = functools.partial(_centripetal_loss_kernel,
                               c=float(c), margin=float(margin),
                               total_n=B, tb=tb,
                               tiles_per_core=tiles_per_core)

    # Clamp the block index so a core never DMAs a fully out-of-range tile
    # (can only happen when split=2 and n_tiles is odd); its contribution is
    # zeroed by the in-kernel row mask.
    def in_map(s, i):
        return (jnp.minimum(s * tiles_per_core + i, last_tile), 0)

    partials = pl.pallas_call(
        kernel,
        out_shape=jax.ShapeDtypeStruct((split, 1, 1), jnp.float32),
        grid_spec=pltpu.PrefetchScalarGridSpec(
            num_scalar_prefetch=0,
            grid=(split, tiles_per_core),
            in_specs=[
                pl.BlockSpec((tb, D), in_map),
                pl.BlockSpec((tb, D), in_map),
            ],
            out_specs=pl.BlockSpec((1, 1, 1), lambda s, i: (s, 0, 0)),
        ),
        compiler_params=pltpu.CompilerParams(
            dimension_semantics=("parallel", "arbitrary"),
            vmem_limit_bytes=vmem_limit,
        ),
    )(rep_anchor, rep_positive)

    # Tiny final reduce (<= 2 floats) + mean outside the kernel.
    return jnp.sum(partials) / jnp.float32(B)


def _reference_loss(rep_anchor, rep_positive, *, c=1.0, margin=0.1):
    sqrt_c = jnp.sqrt(jnp.float32(c))

    def dist0(x):
        n = jnp.linalg.norm(x.astype(jnp.float32), axis=-1)
        z = jnp.clip(sqrt_c * n, -1 + 1e-7, 1 - 1e-7)
        return (2.0 / sqrt_c) * jnp.arctanh(z)

    return jnp.mean(jnp.maximum(margin + dist0(rep_positive) - dist0(rep_anchor), 0.0))


if __name__ == "__main__":
    key = jax.random.PRNGKey(0)
    k_a, k_p, k_n = jax.random.split(key, 3)

    B, D = 16, 32          # small shapes: batch=16, hidden=32
    c, margin = 1.0, 0.1   # PoincareBall curvature and loss margin

    # Scale so all points lie strictly inside the Poincare ball (||x|| < 1/sqrt(c)).
    rep_anchor = 0.05 * jax.random.normal(k_a, (B, D), dtype=jnp.float32)
    rep_positive = 0.05 * jax.random.normal(k_p, (B, D), dtype=jnp.float32)
    rep_negative = 0.05 * jax.random.normal(k_n, (B, D), dtype=jnp.float32)  # unused

    loss = hyperbolic_centripetal_loss(rep_anchor, rep_positive, rep_negative,
                                       c=c, margin=margin)
    jax.block_until_ready(loss)

    ref = _reference_loss(rep_anchor, rep_positive, c=c, margin=margin)
    assert jnp.allclose(loss, ref, rtol=1e-5, atol=1e-6), (loss, ref)

    print("KERNEL_OK")
</pallas_src>

<mosaic_0001>
module attributes {stable_mosaic.version = 11 : i64} {
  func.func @_centripetal_loss_kernel(%arg0: i32, %arg1: i32, %arg2: memref<16x32xf32, #tpu.memory_space<vmem>>, %arg3: memref<16x32xf32, #tpu.memory_space<vmem>>, %arg4: memref<1x1x1xf32, #tpu.memory_space<vmem>>) attributes {dimension_semantics = [#tpu.dimension_semantics<parallel>, #tpu.dimension_semantics<arbitrary>], iteration_bounds = array<i64: 1, 1>, scalar_prefetch = 0 : i64, scratch_operands = 0 : i64, tpu.core_type = #tpu.core_type<tc>, window_params = [{transform_indices = @transform_0, window_bounds = array<i64: 16, 32>}, {transform_indices = @transform_1, window_bounds = array<i64: 16, 32>}, {transform_indices = @transform_2, window_bounds = array<i64: 1, 1, 1>}]} {
    %c0_i32 = arith.constant 0 : i32
    %0 = arith.cmpi eq, %arg1, %c0_i32 : i32
    %1 = arith.extui %0 : i1 to i32
    %c0_i32_0 = arith.constant 0 : i32
    %2 = arith.cmpi ne, %1, %c0_i32_0 : i32
    scf.if %2 {
      %cst_28 = arith.constant 0.000000e+00 : f32
      %64 = vector.broadcast %cst_28 : f32 to vector<1x1x1xf32>
      %c0_29 = arith.constant 0 : index
      %c0_30 = arith.constant 0 : index
      %c0_31 = arith.constant 0 : index
      %65 = vector.load %arg4[%c0_29, %c0_30, %c0_31] : memref<1x1x1xf32, #tpu.memory_space<vmem>>, vector<1x1x1xf32>
      tpu.vector_store %arg4[%c0_29, %c0_30, %c0_31], %64 {strides = array<i32>} : memref<1x1x1xf32, #tpu.memory_space<vmem>>, vector<1x1x1xf32>,
    } else {
    }
    %c0 = arith.constant 0 : index
    %c0_1 = arith.constant 0 : index
    %3 = vector.load %arg2[%c0, %c0_1] : memref<16x32xf32, #tpu.memory_space<vmem>>, vector<16x32xf32>
    %c0_2 = arith.constant 0 : index
    %c0_3 = arith.constant 0 : index
    %4 = vector.load %arg3[%c0_2, %c0_3] : memref<16x32xf32, #tpu.memory_space<vmem>>, vector<16x32xf32>
    %5 = arith.mulf %3, %3 : vector<16x32xf32>
    %cst = arith.constant dense<0.000000e+00> : vector<16xf32>
    %6 = vector.multi_reduction <add>, %5, %cst [1] : vector<16x32xf32> to vector<16xf32>
    %7 = vector.shape_cast %6 : vector<16xf32> to vector<16x1xf32>
    %8 = math.sqrt %7 : vector<16x1xf32>
    %9 = arith.mulf %4, %4 : vector<16x32xf32>
    %cst_4 = arith.constant dense<0.000000e+00> : vector<16xf32>
    %10 = vector.multi_reduction <add>, %9, %cst_4 [1] : vector<16x32xf32> to vector<16xf32>
    %11 = vector.shape_cast %10 : vector<16xf32> to vector<16x1xf32>
    %12 = math.sqrt %11 : vector<16x1xf32>
    %cst_5 = arith.constant 1.000000e+00 : f32
    %13 = vector.broadcast %cst_5 : f32 to vector<16x1xf32>
    %14 = arith.mulf %13, %8 : vector<16x1xf32>
    %cst_6 = arith.constant -0.99999988 : f32
    %cst_7 = arith.constant 0.99999988 : f32
    %15 = vector.broadcast %cst_6 : f32 to vector<16x1xf32>
    %16 = arith.maximumf %15, %14 : vector<16x1xf32>
    %17 = vector.broadcast %cst_7 : f32 to vector<16x1xf32>
    %18 = arith.minimumf %17, %16 : vector<16x1xf32>
    %19 = math.log1p %18 : vector<16x1xf32>
    %cst_8 = arith.constant 0.000000e+00 : f32
    %20 = vector.broadcast %cst_8 : f32 to vector<16x1xf32>
    %21 = arith.subf %20, %18 : vector<16x1xf32>
    %22 = math.log1p %21 : vector<16x1xf32>
    %23 = arith.subf %19, %22 : vector<16x1xf32>
    %cst_9 = arith.constant 5.000000e-01 : f32
    %24 = vector.broadcast %cst_9 : f32 to vector<16x1xf32>
    %25 = arith.mulf %24, %23 : vector<16x1xf32>
    %cst_10 = arith.constant 2.000000e+00 : f32
    %26 = vector.broadcast %cst_10 : f32 to vector<16x1xf32>
    %27 = arith.mulf %26, %25 : vector<16x1xf32>
    %cst_11 = arith.constant 1.000000e+00 : f32
    %28 = vector.broadcast %cst_11 : f32 to vector<16x1xf32>
    %29 = arith.mulf %28, %12 : vector<16x1xf32>
    %cst_12 = arith.constant -0.99999988 : f32
    %cst_13 = arith.constant 0.99999988 : f32
    %30 = vector.broadcast %cst_12 : f32 to vector<16x1xf32>
    %31 = arith.maximumf %30, %29 : vector<16x1xf32>
    %32 = vector.broadcast %cst_13 : f32 to vector<16x1xf32>
    %33 = arith.minimumf %32, %31 : vector<16x1xf32>
    %34 = math.log1p %33 : vector<16x1xf32>
    %cst_14 = arith.constant 0.000000e+00 : f32
    %35 = vector.broadcast %cst_14 : f32 to vector<16x1xf32>
    %36 = arith.subf %35, %33 : vector<16x1xf32>
    %37 = math.log1p %36 : vector<16x1xf32>
    %38 = arith.subf %34, %37 : vector<16x1xf32>
    %cst_15 = arith.constant 5.000000e-01 : f32
    %39 = vector.broadcast %cst_15 : f32 to vector<16x1xf32>
    %40 = arith.mulf %39, %38 : vector<16x1xf32>
    %cst_16 = arith.constant 2.000000e+00 : f32
    %41 = vector.broadcast %cst_16 : f32 to vector<16x1xf32>
    %42 = arith.mulf %41, %40 : vector<16x1xf32>
    %cst_17 = arith.constant 1.000000e-01 : f32
    %43 = vector.broadcast %cst_17 : f32 to vector<16x1xf32>
    %44 = arith.addf %43, %42 : vector<16x1xf32>
    %45 = arith.subf %44, %27 : vector<16x1xf32>
    %cst_18 = arith.constant 0.000000e+00 : f32
    %46 = vector.broadcast %cst_18 : f32 to vector<16x1xf32>
    %47 = arith.maximumf %45, %46 : vector<16x1xf32>
    %c1_i32 = arith.constant 1 : i32
    %48 = arith.muli %arg0, %c1_i32 : i32
    %49 = arith.addi %48, %arg1 : i32
    %c16_i32 = arith.constant 16 : i32
    %50 = arith.muli %49, %c16_i32 : i32
    %51 = tpu.iota {dimensions = array<i32: 0>} : vector<16x1xi32>
    %52 = vector.broadcast %50 : i32 to vector<16x1xi32>
    %53 = arith.addi %52, %51 : vector<16x1xi32>
    %c16_i32_19 = arith.constant 16 : i32
    %54 = vector.broadcast %c16_i32_19 : i32 to vector<16x1xi32>
    %55 = arith.cmpi slt, %53, %54 : vector<16x1xi32>
    %cst_20 = arith.constant 0.000000e+00 : f32
    %56 = vector.broadcast %cst_20 : f32 to vector<16x1xf32>
    %57 = arith.select %55, %47, %56 : vector<16x1xi1>, vector<16x1xf32>
    %c0_21 = arith.constant 0 : index
    %c0_22 = arith.constant 0 : index
    %c0_23 = arith.constant 0 : index
    %58 = vector.load %arg4[%c0_21, %c0_22, %c0_23] : memref<1x1x1xf32, #tpu.memory_space<vmem>>, vector<1x1x1xf32>
    %cst_24 = arith.constant dense<0.000000e+00> : vector<1xf32>
    %59 = vector.multi_reduction <add>, %57, %cst_24 [0] : vector<16x1xf32> to vector<1xf32>
    %60 = vector.shape_cast %59 : vector<1xf32> to vector<1x1xf32>
    %61 = vector.shape_cast %60 : vector<1x1xf32> to vector<1x1x1xf32>
    %62 = arith.addf %58, %61 : vector<1x1x1xf32>
    %c0_25 = arith.constant 0 : index
    %c0_26 = arith.constant 0 : index
    %c0_27 = arith.constant 0 : index
    %63 = vector.load %arg4[%c0_25, %c0_26, %c0_27] : memref<1x1x1xf32, #tpu.memory_space<vmem>>, vector<1x1x1xf32>
    tpu.vector_store %arg4[%c0_25, %c0_26, %c0_27], %62 {strides = array<i32>} : memref<1x1x1xf32, #tpu.memory_space<vmem>>, vector<1x1x1xf32>,
    return
  }
  func.func @transform_0(%arg0: i32, %arg1: i32) -> (i32, i32) {
    %c1_i32 = arith.constant 1 : i32
    %0 = arith.muli %arg0, %c1_i32 : i32
    %1 = arith.addi %0, %arg1 : i32
    %c0_i32 = arith.constant 0 : i32
    %2 = arith.minsi %1, %c0_i32 : i32
    %c0_i32_0 = arith.constant 0 : i32
    %c0_i32_1 = arith.constant 0 : i32
    return %2, %c0_i32_0 : i32, i32
  }
  func.func @transform_1(%arg0: i32, %arg1: i32) -> (i32, i32) {
    %c1_i32 = arith.constant 1 : i32
    %0 = arith.muli %arg0, %c1_i32 : i32
    %1 = arith.addi %0, %arg1 : i32
    %c0_i32 = arith.constant 0 : i32
    %2 = arith.minsi %1, %c0_i32 : i32
    %c0_i32_0 = arith.constant 0 : i32
    %c0_i32_1 = arith.constant 0 : i32
    return %2, %c0_i32_0 : i32, i32
  }
  func.func @transform_2(%arg0: i32, %arg1: i32) -> (i32, i32, i32) {
    %c0_i32 = arith.constant 0 : i32
    %c0_i32_0 = arith.constant 0 : i32
    %c0_i32_1 = arith.constant 0 : i32
    return %arg0, %c0_i32, %c0_i32_0 : i32, i32, i32
  }
}

</mosaic_0001>

<bundles_post_ra>
// kernel: tpu_custom_call.1
= control target key start
LH: loop header
LB: loop body
LE: loop exit
PB: predicated region body
PF: predicated region fallthrough
CT: control target
= control target key end

     0   :  { %7 = vsyncpa [#allocation3], 0  ;;  %s480_s0 = inlined_call_operand.hbm [shape: f32[16,32], index: 0, kind: input, shape index: {}]   ;;  %s481_s1 = inlined_call_operand.hbm [shape: f32[16,32], index: 1, kind: input, shape index: {}]   ;;  %s482_s2 = inlined_call_operand.hbm [shape: f32[1,1,1], index: 2, kind: output, shape index: {}]  }
   0x1   :  { %8 = vsyncpa [#allocation6], 0 }
   0x2   :  { %9 = vsyncpa [#allocation4], 0  ;;  %s366_s9 = smov [#allocation2]   ;;  %s294_s13 = scalar_lea.hbm %s480_s0, 256 }
   0x3   :  { %s21_s10 = sshll.u32 %s366_s9, 4  ;;  %p295_p0 = scmp.ne.s32.totalorder %s480_s0, %s294_s13  ;;  %s22_s10 = int_to_ptr.vmem [resolvable:$true] %s21_s10 }
   0x4   :  { %p298_p1 = scmp.lt.u32.totalorder %s294_s13, %s480_s0 }
   0x6   :  { %p300_p2 = pnand %p298_p1, %p295_p0 }
   0x8   :  { %303 = shalt.err (!%p300_p2)
}
   0x9   :  { %s304_s18 = scalar_lea.vmem %s22_s10, 256  ;;  %p309_p4 = scmp.lt.s32.totalorder %s22_s10, %s22_s10 }
   0xa   :  { %p305_p3 = scmp.ne.s32.totalorder %s22_s10, %s304_s18  ;;  %p310_p5 = scmp.lt.s32.totalorder %s304_s18, %s304_s18 }
   0xc   :  { %p311_p6 = por %p310_p5, %p309_p4 }
   0xe   :  { %p312_p7 = pnand %p311_p6, %p305_p3 }
  0x10   :  { %315 = shalt.err (!%p312_p7)
}
  0x11   :  { %s367_s19 = smov 128   ;;  %s368_s20 = smov 8  }
  0x12   :  { %27 = dma.hbm_to_vmem [thread:$0]  %s480_s0, 256, %s22_s10, [#allocation3], %s367_s19, %s367_s19, %s368_s20  }
  0x13   :  { %s369_s23 = smov [#allocation5]   ;;  %s316_s27 = scalar_lea.hbm %s481_s1, 256 }
  0x14   :  { %s39_s24 = sshll.u32 %s369_s23, 4  ;;  %p317_p8 = scmp.ne.s32.totalorder %s481_s1, %s316_s27  ;;  %s40_s24 = int_to_ptr.vmem [resolvable:$true] %s39_s24 }
  0x15   :  { %p320_p9 = scmp.lt.u32.totalorder %s316_s27, %s481_s1 }
  0x17   :  { %p322_p10 = pnand %p320_p9, %p317_p8 }
  0x19   :  { %325 = shalt.err (!%p322_p10)
}
  0x1a   :  { %s326_s4 = scalar_lea.vmem %s40_s24, 256  ;;  %p331_p12 = scmp.lt.s32.totalorder %s40_s24, %s40_s24 }
  0x1b   :  { %p327_p11 = scmp.ne.s32.totalorder %s40_s24, %s326_s4  ;;  %p332_p13 = scmp.lt.s32.totalorder %s326_s4, %s326_s4 }
  0x1d   :  { %p333_p0 = por %p332_p13, %p331_p12 }
  0x1f   :  { %p334_p1 = pnand %p333_p0, %p327_p11 }
  0x21   :  { %337 = shalt.err (!%p334_p1)
}
  0x22   :  { %45 = dma.hbm_to_vmem [thread:$0]  %s481_s1, 256, %s40_s24, [#allocation6], %s367_s19, %s367_s19, %s368_s20  }
  0x23   :  { %360 = dma.done.wait [#allocation3], 256  }
  0x24   :  { %361 = vsyncadd [#allocation3], 4294967040 }
  0x25   :  { %362 = dma.done.wait [#allocation6], 256  }
  0x26   :  { %363 = vsyncadd [#allocation6], 4294967040  ;;  %v68_v0 = vld [vmem:[#allocation5] sm:$0xff]  ;;  %vm72_vm0 = vcmask 261120   ;;  %v66_v1 = vld [vmem:[#allocation2] sm:$0xff]  ;;  %vm64_vm1 = vcmask 0  }
  0x27   :  { %v69_v2 = vld [vmem:[#allocation5 + $0x8] sm:$0xff]  ;;  %v93_v3 = vmul.f32 %v68_v0, %v68_v0  ;;  %v70_v4 = vmul.f32 %v66_v1, %v66_v1  ;;  %v67_v6 = vld [vmem:[#allocation2 + $0x8] sm:$0xff]  ;;  %v370_v12 = vmov 0.0   ;;  %s371_s1 = smov [#allocation7]  }
  0x28   :  { %v94_v5 = vmul.f32 %v69_v2, %v69_v2  ;;  %v71_v7 = vmul.f32 %v67_v6, %v67_v6  ;;  %65 = vst.msk [vmem:[#allocation7] sm:$0x1] %vm64_vm1, %v370_v12  ;;  %s246_s6 = sshll.u32 %s371_s1, 4  ;;  %s247_s6 = int_to_ptr.vmem [resolvable:$true] %s246_s6 }
  0x29   :  { %v95_v8 = vsel %vm72_vm0, %v93_v3, 0.0  ;;  %v73_v9 = vsel %vm72_vm0, %v70_v4, 0.0  ;;  %s338_s7 = scalar_lea.vmem %s247_s6, 16  ;;  %s342_s8 = scalar_lea.vmem %s247_s6, 32 }
  0x2a   :  { %96 = vadd.xlane.f32.xlu0 %v95_v8  ;;  %74 = vadd.xlane.f32.xlu1 %v73_v9  ;;  %v98_v10 = vsel %vm72_vm0, %v94_v5, 0.0  ;;  %v76_v11 = vsel %vm72_vm0, %v71_v7, 0.0  ;;  %p339_p2 = scmp.ne.s32.totalorder %s247_s6, %s338_s7  ;;  %p343_p3 = scmp.lt.s32.totalorder %s247_s6, %s247_s6 }
  0x2b   :  { %p344_p4 = scmp.lt.s32.totalorder %s342_s8, %s338_s7 }
  0x2d   :  { %p345_p5 = por %p344_p4, %p343_p3 }
  0x2e   :  { %99 = vadd.xlane.f32.xlu0 %v98_v10  ;;  %77 = vadd.xlane.f32.xlu1 %v76_v11 }
  0x2f   :  { %p346_p6 = pnand %p345_p5, %p339_p2 }
  0xb7   :  { %v97_v13 = vpop.xlane.xlu0 %96  ;;  %v75_v14 = vpop.xlane.xlu1 %74 }
  0xb8   :  { %270 = vrsqrt.f32 %v97_v13  ;;  %vm103_vm2 = vcmp.eq.f32.partialorder %v97_v13, inf  ;;  %v106_v20 = vand.u32 2147483648, %v97_v13  ;;  %vm105_vm3 = vcmp.eq.f32.partialorder %v97_v13, 0.0 }
  0xb9   :  { %272 = vrsqrt.f32 %v75_v14  ;;  %vm81_vm4 = vcmp.eq.f32.partialorder %v75_v14, inf  ;;  %v84_v23 = vand.u32 2147483648, %v75_v14  ;;  %vm83_vm5 = vcmp.eq.f32.partialorder %v75_v14, 0.0 }
  0xbb   :  { %v100_v15 = vpop.xlane.xlu0 %99  ;;  %v78_v16 = vpop.xlane.xlu1 %77 }
  0xbc   :  { %274 = vrsqrt.f32 %v100_v15  ;;  %vm110_vm6 = vcmp.eq.f32.partialorder %v100_v15, inf  ;;  %v113_v32 = vand.u32 2147483648, %v100_v15  ;;  %vm112_vm7 = vcmp.eq.f32.partialorder %v100_v15, 0.0 }
  0xbd   :  { %276 = vrsqrt.f32 %v78_v16  ;;  %vm88_vm8 = vcmp.eq.f32.partialorder %v78_v16, inf  ;;  %vm90_vm9 = vcmp.eq.f32.partialorder %v78_v16, 0.0  ;;  %v91_v36 = vand.u32 2147483648, %v78_v16 }
  0xc2   :  { %v271_v17 = vpop.eup %270 }
  0xc3   :  { %v273_v18 = vpop.eup %272  ;;  %v102_v19 = vmul.f32 %v271_v17, %v97_v13 }
  0xc4   :  { %v80_v21 = vmul.f32 %v273_v18, %v75_v14 }
  0xc5   :  { %v104_v22 = vsel %vm103_vm2, %v97_v13, %v102_v19 }
  0xc6   :  { %v275_v24 = vpop.eup %274  ;;  %v107_v25 = vsel %vm105_vm3, %v106_v20, %v104_v22  ;;  %v82_v26 = vsel %vm81_vm4, %v75_v14, %v80_v21 }
  0xc7   :  { %v277_v27 = vpop.eup %276  ;;  %v85_v28 = vsel %vm83_vm5, %v84_v23, %v82_v26  ;;  %v109_v29 = vmul.f32 %v275_v24, %v100_v15  ;;  %v412_v30 = vclamps-f32 %v107_v25, 0.9999999 }
  0xc8   :  { %v260_v31 = vclamps-f32 %v85_v28, 0.9999999  ;;  %v87_v33 = vmul.f32 %v277_v27, %v78_v16 }
  0xc9   :  { %v111_v34 = vsel %vm110_vm6, %v100_v15, %v109_v29  ;;  %v167_v41 = vadd.f32 1.0, %v412_v30  ;;  %v418_v47 = vsub.f32 0.0, %v412_v30  ;;  %v170_v50 = vmul.f32 -0.5, %v412_v30 }
  0xca   :  { %v114_v35 = vsel %vm112_vm7, %v113_v32, %v111_v34  ;;  %v119_v37 = vadd.f32 1.0, %v260_v31  ;;  %v137_v38 = vsub.f32 0.0, %v260_v31  ;;  %v89_v40 = vsel %vm88_vm8, %v78_v16, %v87_v33 }
  0xcb   :  { %v263_v39 = vclamps-f32 %v114_v35, 0.9999999  ;;  %v92_v42 = vsel %vm90_vm9, %v91_v36, %v89_v40  ;;  %v122_v51 = vmul.f32 -0.5, %v260_v31  ;;  %v187_v55 = vadd.f32 1.0, %v418_v47 }
  0xcc   :  { %v261_v43 = vclamps-f32 %v92_v42, 0.9999999  ;;  %278 = vlog2.f32 %v119_v37  ;;  %v139_v46 = vadd.f32 1.0, %v137_v38  ;;  %v125_v56 = vand.u32 2147483647, %v260_v31 }
  0xcd   :  { %v176_v44 = vadd.f32 1.0, %v263_v39  ;;  %v415_v45 = vsub.f32 0.0, %v263_v39  ;;  %280 = vlog2.f32 %v167_v41  ;;  %v179_v54 = vmul.f32 -0.5, %v263_v39 }
  0xce   :  { %v128_v48 = vadd.f32 1.0, %v261_v43  ;;  %v138_v49 = vsub.f32 0.0, %v261_v43  ;;  %282 = vlog2.f32 %v139_v46  ;;  %v142_v57 = vmul.f32 -0.5, %v137_v38 }
  0xcf   :  { %v196_v52 = vadd.f32 1.0, %v415_v45  ;;  %v171_v58 = vadd.f32 1.0, %v170_v50  ;;  %v131_v59 = vmul.f32 -0.5, %v261_v43  ;;  %v123_v60 = vadd.f32 1.0, %v122_v51 }
  0xd0   :  { %284 = vlog2.f32 %v128_v48  ;;  %v148_v53 = vadd.f32 1.0, %v138_v49  ;;  %v182_v61 = vand.u32 2147483647, %v263_v39  ;;  %v134_v62 = vand.u32 2147483647, %v261_v43 }
  0xd1   :  { %286 = vlog2.f32 %v176_v44  ;;  %v180_v63 = vadd.f32 1.0, %v179_v54  ;;  %v151_v0 = vmul.f32 -0.5, %v138_v49  ;;  %vm423_vm10 = vcmp.lt.f32.partialorder %v125_v56, 0.0004427343 }
  0xd2   :  { %288 = vlog2.f32 %v148_v53  ;;  %v143_v3 = vadd.f32 1.0, %v142_v57  ;;  %v190_v4 = vmul.f32 -0.5, %v418_v47  ;;  %v199_v5 = vmul.f32 -0.5, %v415_v45 }
  0xd3   :  { %290 = vlog2.f32 %v187_v55  ;;  %v172_v7 = vmul.f32 %v412_v30, %v171_v58  ;;  %v132_v8 = vadd.f32 1.0, %v131_v59  ;;  %v145_v9 = vand.u32 2147483647, %v137_v38 }
  0xd4   :  { %292 = vlog2.f32 %v196_v52  ;;  %v154_v10 = vand.u32 2147483647, %v138_v49  ;;  %v124_v12 = vmul.f32 %v260_v31, %v123_v60  ;;  %vm430_vm11 = vcmp.lt.f32.partialorder %v182_v61, 0.0004427343 }
  0xd5   :  { %vm434_vm12 = vcmp.lt.f32.partialorder %v134_v62, 0.0004427343  ;;  %v173_v15 = vand.u32 2147483647, %v412_v30  ;;  %v181_v17 = vmul.f32 %v263_v39, %v180_v63  ;;  %v152_v20 = vadd.f32 1.0, %v151_v0 }
  0xd6   :  { %v279_v1 = vpop.eup %278  ;;  %v144_v22 = vmul.f32 %v143_v3, %v137_v38  ;;  %v191_v23 = vadd.f32 1.0, %v190_v4  ;;  %v193_v24 = vand.u32 2147483647, %v418_v47  ;;  %v200_v25 = vadd.f32 1.0, %v199_v5 }
  0xd7   :  { %v281_v6 = vpop.eup %280  ;;  %v121_v18 = vmul.f32 0.6931472, %v279_v1  ;;  %v133_v27 = vmul.f32 %v261_v43, %v132_v8  ;;  %vm440_vm13 = vcmp.lt.f32.partialorder %v145_v9, 0.0004427343  ;;  %vm444_vm14 = vcmp.lt.f32.partialorder %v154_v10, 0.0004427343 }
  0xd8   :  { %v283_v11 = vpop.eup %282  ;;  %v169_v32 = vmul.f32 0.6931472, %v281_v6  ;;  %vm450_vm15 = vcmp.lt.f32.partialorder %v173_v15, 0.0004427343  ;;  %v202_v34 = vand.u32 2147483647, %v415_v45  ;;  %v153_v39 = vmul.f32 %v152_v20, %v138_v49 }
  0xd9   :  { %v141_v19 = vmul.f32 0.6931472, %v283_v11  ;;  %v127_v37 = vsel %vm423_vm10, %v124_v12, %v121_v18  ;;  %v192_v42 = vmul.f32 %v191_v23, %v418_v47  ;;  %vm194_vm0 = vcmp.lt.f32.partialorder %v193_v24, 0.0004427343  ;;  %v229_v11 = vld [vmem:[#allocation7] sm:$0x1] }
  0xda   :  { %v285_v16 = vpop.eup %284  ;;  %v201_v43 = vmul.f32 %v200_v25, %v415_v45  ;;  %v175_v52 = vsel %vm450_vm15, %v172_v7, %v169_v32  ;;  %vm203_vm2 = vcmp.lt.f32.partialorder %v202_v34, 0.0004427343 }
  0xdb   :  { %v287_v21 = vpop.eup %286  ;;  %v130_v26 = vmul.f32 0.6931472, %v285_v16  ;;  %v147_v31 = vsel %vm440_vm13, %v144_v22, %v141_v19 }
  0xdc   :  { %v289_v30 = vpop.eup %288  ;;  %v178_v36 = vmul.f32 0.6931472, %v287_v21  ;;  %v157_v48 = vsub.f32 %v127_v37, %v147_v31 }
  0xdd   :  { %v291_v35 = vpop.eup %290  ;;  %v150_v38 = vmul.f32 0.6931472, %v289_v30  ;;  %v136_v44 = vsel %vm434_vm12, %v133_v27, %v130_v26 }
  0xde   :  { %v293_v40 = vpop.eup %292  ;;  %v189_v41 = vmul.f32 0.6931472, %v291_v35  ;;  %v184_v47 = vsel %vm430_vm11, %v181_v17, %v178_v36  ;;  %v159_v55 = vmul.f32 0.5, %v157_v48 }
  0xdf   :  { %v156_v46 = vsel %vm444_vm14, %v153_v39, %v150_v38  ;;  %v198_v50 = vmul.f32 0.6931472, %v293_v40 }
  0xe0   :  { %v158_v51 = vsub.f32 %v136_v44, %v156_v46  ;;  %v195_v49 = vsel %vm194_vm0, %v192_v42, %v189_v41  ;;  %v161_v61 = vmul.f32 2.0, %v159_v55 }
  0xe1   :  { %v204_v53 = vsel %vm203_vm2, %v201_v43, %v198_v50  ;;  %v205_v54 = vsub.f32 %v175_v52, %v195_v49 }
  0xe2   :  { %v206_v45 = vsub.f32 %v184_v47, %v204_v53  ;;  %v160_v57 = vmul.f32 0.5, %v158_v51 }
  0xe3   :  { %v207_v56 = vmul.f32 0.5, %v205_v54 }
  0xe4   :  { %v208_v58 = vmul.f32 0.5, %v206_v45  ;;  %v162_v63 = vmul.f32 2.0, %v160_v57 }
  0xe5   :  { %v209_v59 = vmul.f32 2.0, %v207_v56 }
  0xe6   :  { %v210_v60 = vmul.f32 2.0, %v208_v58 }
  0xe7   :  { %v211_v62 = vadd.f32 0.1, %v209_v59 }
  0xe8   :  { %v212_v0 = vadd.f32 0.1, %v210_v60 }
  0xe9   :  { %v213_v1 = vsub.f32 %v211_v62, %v161_v61 }
  0xea   :  { %v214_v2 = vsub.f32 %v212_v0, %v162_v63 }
  0xeb   :  { %v215_v3 = vmax.f32 %v213_v1, 0.0 }
  0xec   :  { %v216_v4 = vmax.f32 %v214_v2, 0.0 }
  0xee   :  { %v230_v5 = vadd.f32 %v216_v4, %v215_v3 }
  0xf0   :  { %v231_v6 = vrot.slane %v230_v5, 4 }
  0xf2   :  { %v232_v7 = vadd.f32 %v231_v6, %v230_v5 }
  0xf4   :  { %v233_v8 = vrot.slane %v232_v7, 2 }
  0xf6   :  { %v234_v9 = vadd.f32 %v233_v8, %v232_v7 }
  0xf8   :  { %v235_v10 = vrot.slane %v234_v9, 1 }
  0xfa   :  { %v236_v12 = vadd.f32 %v235_v10, %v234_v9 }
  0xfc   :  { %v237_v13 = vadd.f32 %v236_v12, %v229_v11 }
  0xfe   :  { %239 = vst.msk [vmem:[#allocation7] sm:$0x1] %vm64_vm1, %v237_v13 }
  0xff   :  { %349 = shalt.err (!%p346_p6)
}
 0x100   :  { %s350_s11 = scalar_lea.hbm %s482_s2, 16 }
 0x101   :  { %p351_p7 = scmp.ne.s32.totalorder %s482_s2, %s350_s11  ;;  %p354_p8 = scmp.lt.u32.totalorder %s350_s11, %s482_s2 }
 0x103   :  { %p356_p9 = pnand %p354_p8, %p351_p7 }
 0x105   :  { %359 = shalt.err (!%p356_p9)
}
 0x106   :  { %249 = dma.vmem_to_hbm [thread:$0]  %s247_s6, 16, %s482_s2, [#allocation4]  }
 0x107   :  { %364 = dma.done.wait [#allocation4], 16  }
 0x108   :  { %365 = vsyncadd [#allocation4], 4294967280 }
 0x109   :  { %253 = vsyncpa [#allocation3], 1 }
 0x10a   :  { %254 = vsyncpa [#allocation6], 1 }
 0x10b   :  { %255 = vsyncpa [#allocation4], 1 }

</bundles_post_ra>
